<compile_context>
chip_gen: v7x
topology: tpu7x:2x2x1
jax: 0.10.0
libtpu: 0.0.40
codegen_flags: <defaults>
</compile_context>

<pallas_src>
import math

import jax
import jax.numpy as jnp
from jax.experimental import pallas as pl
from jax.experimental.pallas import tpu as pltpu


def _round_up(a, m):
    return ((a + m - 1) // m) * m


def _device_kind():
    try:
        return jax.devices()[0].device_kind.lower()
    except Exception:
        return ""


def _is_v7x():
    k = _device_kind()
    return ("v7" in k) or ("7x" in k)


def _is_v5e():
    k = _device_kind()
    return ("v5e" in k) or ("v5 lite" in k) or ("v5lite" in k)


def _make_mlp_kernel(n_layers, bf16_tanh):
    """Kernel body: refs = (x_ref, W0, b0, W1, b1, ..., Wn, bn, out_ref)."""

    def kernel(*refs):
        x_ref = refs[0]
        out_ref = refs[-1]
        params = refs[1:-1]

        h = x_ref[...].astype(jnp.float32)
        for li in range(n_layers):
            w_ref = params[2 * li]
            b = params[2 * li + 1][...].astype(jnp.float32)
            if w_ref.shape[0] == 1:
                # K == 1 layer (scalar time input): rank-1 outer product done as
                # a VPU broadcast mul-add; skip MXU fill/drain.
                z = h.astype(jnp.float32) * w_ref[...].astype(jnp.float32) + b
            else:
                w = w_ref[...]
                # bf16 MXU operands when enabled; accumulate in f32 always.
                z = jnp.dot(h.astype(w.dtype), w,
                            preferred_element_type=jnp.float32) + b
            if li < n_layers - 1:
                if bf16_tanh:
                    # bf16 EUP tanh (v6e/v7x); result feeds next bf16 matmul.
                    h = jnp.tanh(z.astype(jnp.bfloat16))
                else:
                    h = jnp.tanh(z)
            else:
                h = z
        out_ref[...] = h.astype(out_ref.dtype)

    return kernel


def pinn_forward(x, params, *, max_tile_n=2048, lane=128,
                 use_bf16_matmul=False, bf16_tanh=None, target_grid_steps=None):
    """x: [N, layers[0]] float32; params: list of (W[in,out], b[1,out])."""
    x = jnp.asarray(x, jnp.float32)
    n, in_dim = x.shape
    n_layers = len(params)
    out_dim = params[-1][0].shape[1]

    if bf16_tanh is None:
        # bf16 tanh only where the EUP supports it (not v5e).
        bf16_tanh = use_bf16_matmul and not _is_v5e()
    if target_grid_steps is None:
        # v7x has 2 TensorCores -> keep >= 2 parallel steps; 1 step elsewhere.
        target_grid_steps = 2 if _is_v7x() else 1

    # --- zero-pad ALL layer widths (incl. the last) to lane multiples -------
    # Numerically identical: padded lanes carry zero weights/biases and
    # tanh(0) = 0.  A 128-wide last layer makes the output store lane-dense.
    padded = []
    prev_out_p = in_dim
    for li, (w, b) in enumerate(params):
        w = jnp.asarray(w, jnp.float32)
        b = jnp.asarray(b, jnp.float32).reshape(1, -1)
        f_in, f_out = w.shape
        in_p = prev_out_p
        out_p = _round_up(f_out, lane)
        w_p = jnp.zeros((in_p, out_p), jnp.float32).at[:f_in, :f_out].set(w)
        b_p = jnp.zeros((1, out_p), jnp.float32).at[:, :f_out].set(b)
        if use_bf16_matmul and in_p > 1:
            w_p = w_p.astype(jnp.bfloat16)  # MXU operand; accumulation stays f32
        padded.append((w_p, b_p))
        prev_out_p = out_p
    out_p_last = padded[-1][0].shape[1]
    max_width = max(in_dim, max(wp.shape[1] for wp, _ in padded))

    # --- batch tiling: whole batch in `target_grid_steps` steps (capped) ----
    n8 = _round_up(n, 8)
    tile_n = min(_round_up(max_tile_n, 8), _round_up(pl.cdiv(n8, target_grid_steps), 8))
    tile_n = max(tile_n, 8)
    if tile_n >= n:
        tile_n = n  # single full-extent block (always a legal block shape)
    num_tiles = pl.cdiv(n, tile_n)  # ragged last block is masked by Pallas

    flat_args = [x]
    in_specs = [pl.BlockSpec((tile_n, in_dim), lambda i: (i, 0))]
    for w_p, b_p in padded:
        flat_args.append(w_p)
        in_specs.append(pl.BlockSpec(w_p.shape, lambda i: (0, 0)))  # resident
        flat_args.append(b_p)
        in_specs.append(pl.BlockSpec(b_p.shape, lambda i: (0, 0)))  # resident

    # VMEM budget: double-buffered x/out blocks + live activation slabs + params.
    param_bytes = sum(int(wp.size) * wp.dtype.itemsize + int(bp.size) * 4
                      for wp, bp in padded)
    est_vmem = (2 * tile_n * (in_dim + out_p_last) * 4
                + 6 * tile_n * max_width * 4
                + param_bytes)
    vmem_limit = None
    if est_vmem > (12 << 20):  # only needed when pushing past v5e's 16 MiB default
        vmem_limit = min(est_vmem + (8 << 20), 100 << 20)

    out = pl.pallas_call(
        _make_mlp_kernel(n_layers, bf16_tanh),
        out_shape=jax.ShapeDtypeStruct((n, out_p_last), jnp.float32),
        grid=(num_tiles,),
        in_specs=in_specs,
        out_specs=pl.BlockSpec((tile_n, out_p_last), lambda i: (i, 0)),
        compiler_params=pltpu.CompilerParams(
            dimension_semantics=("parallel",),  # batch-parallel (2 TCs on v7x)
            vmem_limit_bytes=vmem_limit,
        ),
    )(*flat_args)
    return out[:, :out_dim]


def init_pinn_params(layers, key):
    """Xavier-uniform weights, zero biases (matches nn.init.xavier_uniform_)."""
    params = []
    for i in range(len(layers) - 1):
        fan_in, fan_out = layers[i], layers[i + 1]
        key, sub = jax.random.split(key)
        bound = math.sqrt(6.0 / (fan_in + fan_out))
        # PyTorch weight is [out, in]; we store the transposed [in, out] layout.
        w = jax.random.uniform(
            sub, (fan_in, fan_out), minval=-bound, maxval=bound, dtype=jnp.float32
        )
        b = jnp.zeros((1, fan_out), dtype=jnp.float32)
        params.append((w, b))
    return params


def pinn_forward_ref(x, params, use_bf16_matmul=False, bf16_tanh=False):
    """Pure-JAX reference for correctness checking."""
    h = x.astype(jnp.float32)
    for li, (w, b) in enumerate(params):
        w = jnp.asarray(w, jnp.float32)
        b = jnp.asarray(b, jnp.float32).reshape(1, -1)
        if use_bf16_matmul and w.shape[0] > 1:
            z = jnp.dot(h.astype(jnp.bfloat16), w.astype(jnp.bfloat16),
                        preferred_element_type=jnp.float32) + b
        else:
            z = jnp.dot(h.astype(jnp.float32), w,
                        precision=jax.lax.Precision.HIGHEST) + b
        if li < len(params) - 1:
            h = jnp.tanh(z.astype(jnp.bfloat16)) if bf16_tanh else jnp.tanh(z)
        else:
            h = z
    return h


if __name__ == "__main__":
    # Typical PINN config: scalar time input t -> 7 state variables
    # (D1, D2, I_sc, I_p, I_eff, G, G_sc).  Small batch per test guidelines.
    layers = [1, 32, 32, 7]
    batch = 200

    key = jax.random.PRNGKey(0)
    key, k_x = jax.random.split(key)
    t = jax.random.uniform(k_x, (batch, layers[0]), dtype=jnp.float32) * 100.0
    params = init_pinn_params(layers, key)

    # f32 path (near-exact match to the high-precision reference).
    out = jax.block_until_ready(pinn_forward(t, params))
    ref = pinn_forward_ref(t, params)
    assert out.shape == (batch, layers[-1])
    assert jnp.allclose(out, ref, atol=1e-3, rtol=1e-3), \
        float(jnp.max(jnp.abs(out - ref)))

    # Ragged batch (not a multiple of the tile) -> exercises the masked last
    # output block now that wrapper-side batch padding was dropped.
    t_ragged = t[:77]
    out_r = jax.block_until_ready(pinn_forward(t_ragged, params))
    assert out_r.shape == (77, layers[-1])
    assert jnp.allclose(out_r, ref[:77], atol=1e-3, rtol=1e-3)

    # bf16-MXU path (f32 accumulation; bf16 tanh where the EUP supports it).
    bf16_tanh = not _is_v5e()
    out_bf = jax.block_until_ready(
        pinn_forward(t, params, use_bf16_matmul=True, bf16_tanh=bf16_tanh))
    ref_bf = pinn_forward_ref(t, params, use_bf16_matmul=True, bf16_tanh=bf16_tanh)
    assert jnp.allclose(out_bf, ref_bf, atol=3e-2, rtol=3e-2)

    print("KERNEL_OK")
</pallas_src>

<mosaic_0001>
module attributes {stable_mosaic.version = 11 : i64} {
  func.func @kernel(%arg0: i32, %arg1: memref<200x1xf32, #tpu.memory_space<vmem>>, %arg2: memref<1x128xf32, #tpu.memory_space<vmem>>, %arg3: memref<1x128xf32, #tpu.memory_space<vmem>>, %arg4: memref<128x128xf32, #tpu.memory_space<vmem>>, %arg5: memref<1x128xf32, #tpu.memory_space<vmem>>, %arg6: memref<128x128xf32, #tpu.memory_space<vmem>>, %arg7: memref<1x128xf32, #tpu.memory_space<vmem>>, %arg8: memref<200x128xf32, #tpu.memory_space<vmem>>) attributes {dimension_semantics = [#tpu.dimension_semantics<parallel>], iteration_bounds = array<i64: 1>, scalar_prefetch = 0 : i64, scratch_operands = 0 : i64, tpu.core_type = #tpu.core_type<tc>, window_params = [{transform_indices = @transform_0, window_bounds = array<i64: 200, 1>}, {pipeline_mode = #tpu.pipeline_mode<synchronous>, transform_indices = @transform_1, window_bounds = array<i64: 1, 128>}, {pipeline_mode = #tpu.pipeline_mode<synchronous>, transform_indices = @transform_2, window_bounds = array<i64: 1, 128>}, {pipeline_mode = #tpu.pipeline_mode<synchronous>, transform_indices = @transform_3, window_bounds = array<i64: 128, 128>}, {pipeline_mode = #tpu.pipeline_mode<synchronous>, transform_indices = @transform_4, window_bounds = array<i64: 1, 128>}, {pipeline_mode = #tpu.pipeline_mode<synchronous>, transform_indices = @transform_5, window_bounds = array<i64: 128, 128>}, {pipeline_mode = #tpu.pipeline_mode<synchronous>, transform_indices = @transform_6, window_bounds = array<i64: 1, 128>}, {transform_indices = @transform_7, window_bounds = array<i64: 200, 128>}]} {
    %c0 = arith.constant 0 : index
    %c0_0 = arith.constant 0 : index
    %0 = vector.load %arg1[%c0, %c0_0] : memref<200x1xf32, #tpu.memory_space<vmem>>, vector<200x1xf32>
    %c0_1 = arith.constant 0 : index
    %c0_2 = arith.constant 0 : index
    %1 = vector.load %arg3[%c0_1, %c0_2] : memref<1x128xf32, #tpu.memory_space<vmem>>, vector<1x128xf32>
    %c0_3 = arith.constant 0 : index
    %c0_4 = arith.constant 0 : index
    %2 = vector.load %arg2[%c0_3, %c0_4] : memref<1x128xf32, #tpu.memory_space<vmem>>, vector<1x128xf32>
    %3 = vector.broadcast %0 : vector<200x1xf32> to vector<200x128xf32>
    %4 = vector.broadcast %2 : vector<1x128xf32> to vector<200x128xf32>
    %5 = arith.mulf %3, %4 : vector<200x128xf32>
    %6 = vector.broadcast %1 : vector<1x128xf32> to vector<200x128xf32>
    %7 = arith.addf %5, %6 : vector<200x128xf32>
    %8 = math.tanh %7 : vector<200x128xf32>
    %c0_5 = arith.constant 0 : index
    %c0_6 = arith.constant 0 : index
    %9 = vector.load %arg5[%c0_5, %c0_6] : memref<1x128xf32, #tpu.memory_space<vmem>>, vector<1x128xf32>
    %c0_7 = arith.constant 0 : index
    %c0_8 = arith.constant 0 : index
    %10 = vector.load %arg4[%c0_7, %c0_8] : memref<128x128xf32, #tpu.memory_space<vmem>>, vector<128x128xf32>
    %cst = arith.constant dense<0.000000e+00> : vector<200x128xf32>
    %11 = tpu.matmul %8, %10, %cst {dimension_numbers = #tpu.dot_dimension_numbers<[1], [0], [0], [1], [0, 0, 1, 1], [], []>} : vector<200x128xf32>, vector<128x128xf32>, vector<200x128xf32> -> vector<200x128xf32>
    %12 = vector.broadcast %9 : vector<1x128xf32> to vector<200x128xf32>
    %13 = arith.addf %11, %12 : vector<200x128xf32>
    %14 = math.tanh %13 : vector<200x128xf32>
    %c0_9 = arith.constant 0 : index
    %c0_10 = arith.constant 0 : index
    %15 = vector.load %arg7[%c0_9, %c0_10] : memref<1x128xf32, #tpu.memory_space<vmem>>, vector<1x128xf32>
    %c0_11 = arith.constant 0 : index
    %c0_12 = arith.constant 0 : index
    %16 = vector.load %arg6[%c0_11, %c0_12] : memref<128x128xf32, #tpu.memory_space<vmem>>, vector<128x128xf32>
    %cst_13 = arith.constant dense<0.000000e+00> : vector<200x128xf32>
    %17 = tpu.matmul %14, %16, %cst_13 {dimension_numbers = #tpu.dot_dimension_numbers<[1], [0], [0], [1], [0, 0, 1, 1], [], []>} : vector<200x128xf32>, vector<128x128xf32>, vector<200x128xf32> -> vector<200x128xf32>
    %18 = vector.broadcast %15 : vector<1x128xf32> to vector<200x128xf32>
    %19 = arith.addf %17, %18 : vector<200x128xf32>
    %c0_14 = arith.constant 0 : index
    %c0_15 = arith.constant 0 : index
    %20 = vector.load %arg8[%c0_14, %c0_15] : memref<200x128xf32, #tpu.memory_space<vmem>>, vector<200x128xf32>
    tpu.vector_store %arg8[%c0_14, %c0_15], %19 {strides = array<i32>} : memref<200x128xf32, #tpu.memory_space<vmem>>, vector<200x128xf32>,
    return
  }
  func.func @transform_0(%arg0: i32) -> (i32, i32) {
    %c0_i32 = arith.constant 0 : i32
    %c0_i32_0 = arith.constant 0 : i32
    return %arg0, %c0_i32 : i32, i32
  }
  func.func @transform_1(%arg0: i32) -> (i32, i32) {
    %c0_i32 = arith.constant 0 : i32
    %c0_i32_0 = arith.constant 0 : i32
    %c0_i32_1 = arith.constant 0 : i32
    return %c0_i32, %c0_i32_0 : i32, i32
  }
  func.func @transform_2(%arg0: i32) -> (i32, i32) {
    %c0_i32 = arith.constant 0 : i32
    %c0_i32_0 = arith.constant 0 : i32
    %c0_i32_1 = arith.constant 0 : i32
    return %c0_i32, %c0_i32_0 : i32, i32
  }
  func.func @transform_3(%arg0: i32) -> (i32, i32) {
    %c0_i32 = arith.constant 0 : i32
    %c0_i32_0 = arith.constant 0 : i32
    %c0_i32_1 = arith.constant 0 : i32
    return %c0_i32, %c0_i32_0 : i32, i32
  }
  func.func @transform_4(%arg0: i32) -> (i32, i32) {
    %c0_i32 = arith.constant 0 : i32
    %c0_i32_0 = arith.constant 0 : i32
    %c0_i32_1 = arith.constant 0 : i32
    return %c0_i32, %c0_i32_0 : i32, i32
  }
  func.func @transform_5(%arg0: i32) -> (i32, i32) {
    %c0_i32 = arith.constant 0 : i32
    %c0_i32_0 = arith.constant 0 : i32
    %c0_i32_1 = arith.constant 0 : i32
    return %c0_i32, %c0_i32_0 : i32, i32
  }
  func.func @transform_6(%arg0: i32) -> (i32, i32) {
    %c0_i32 = arith.constant 0 : i32
    %c0_i32_0 = arith.constant 0 : i32
    %c0_i32_1 = arith.constant 0 : i32
    return %c0_i32, %c0_i32_0 : i32, i32
  }
  func.func @transform_7(%arg0: i32) -> (i32, i32) {
    %c0_i32 = arith.constant 0 : i32
    %c0_i32_0 = arith.constant 0 : i32
    return %arg0, %c0_i32 : i32, i32
  }
}

</mosaic_0001>

<bundles_post_ra>
// kernel: tpu_custom_call.1
= control target key start
LH: loop header
LB: loop body
LE: loop exit
PB: predicated region body
PF: predicated region fallthrough
CT: control target
= control target key end

     0   :  { %12 = vsyncpa [#allocation3], 0  ;;  %s1740_s0 = inlined_call_operand.vmem [shape: f32[200,1], index: 0, kind: input, shape index: {}]   ;;  %s1741_s1 = inlined_call_operand.vmem [shape: f32[1,128], index: 1, kind: input, shape index: {}]   ;;  %s1742_s2 = inlined_call_operand.vmem [shape: f32[1,128], index: 2, kind: input, shape index: {}]   ;;  %s1743_s3 = inlined_call_operand.vmem [shape: f32[128,128], index: 3, kind: input, shape index: {}]   ;;  %s1744_s4 = inlined_call_operand.vmem [shape: f32[1,128], index: 4, kind: input, shape index: {}]   ;;  %s1745_s5 = inlined_call_operand.hbm [shape: f32[128,128], index: 5, kind: input, shape index: {}]   ;;  %s1746_s6 = inlined_call_operand.vmem [shape: f32[1,128], index: 6, kind: input, shape index: {}]   ;;  %s1747_s7 = inlined_call_operand.hbm [shape: f32[200,128], index: 7, kind: output, shape index: {}]  }
   0x1   :  { %13 = vsyncpa [#allocation4], 0  ;;  %s1279_s24 = smov [#allocation2]   ;;  %s1231_s28 = scalar_lea.hbm %s1745_s5, 2048 }
   0x2   :  { %s29_s25 = sshll.u32 %s1279_s24, 4  ;;  %p1232_p0 = scmp.ne.s32.totalorder %s1745_s5, %s1231_s28  ;;  %s30_s25 = int_to_ptr.vmem [resolvable:$true] %s29_s25 }
   0x3   :  { %p1235_p1 = scmp.lt.u32.totalorder %s1231_s28, %s1745_s5 }
   0x5   :  { %p1237_p2 = pnand %p1235_p1, %p1232_p0 }
   0x7   :  { %1240 = shalt.err (!%p1237_p2)
}
   0x8   :  { %s1241_s10 = scalar_lea.vmem %s30_s25, 2048  ;;  %p1246_p4 = scmp.lt.s32.totalorder %s30_s25, %s30_s25 }
   0x9   :  { %p1242_p3 = scmp.ne.s32.totalorder %s30_s25, %s1241_s10  ;;  %p1247_p5 = scmp.lt.s32.totalorder %s1241_s10, %s1241_s10 }
   0xb   :  { %p1248_p6 = por %p1247_p5, %p1246_p4 }
   0xd   :  { %p1249_p7 = pnand %p1248_p6, %p1242_p3 }
   0xf   :  { %1252 = shalt.err (!%p1249_p7)
}
  0x10   :  { %s1280_s11 = smov 128   ;;  %s1281_s12 = smov 8  }
  0x11   :  { %35 = dma.hbm_to_vmem [thread:$0]  %s1745_s5, 2048, %s30_s25, [#allocation3], %s1280_s11, %s1280_s11, %s1281_s12  }
  0x12   :  { %1275 = dma.done.wait [#allocation3], 2048  }
  0x13   :  { %1276 = vsyncadd [#allocation3], 4294965248  ;;  %v1282_v0 = vmov 0   ;;  %v1283_v1 = vmov 0.0|0.0   ;;  %v43_v2 = vld [vmem:[%s1740_s0 + $0x10] sm:$0xff]  ;;  %v41_v3 = vld [vmem:[%s1740_s0] sm:$0xff] }
  0x14   :  { %1130 = vset.pattern.permute.xlu1 %v1282_v0  ;;  %1129 = vset.pattern.permute.xlu0 %v1282_v0  ;;  %v44_v4 = vld [vmem:[%s1740_s0 + $0x18] sm:$0xff]  ;;  %v42_v5 = vld [vmem:[%s1740_s0 + $0x8] sm:$0xff]  ;;  %v45_v7 = vld [vmem:[%s1740_s0 + $0x20] sm:$0xff]  ;;  %vm1284_vm0 = vmmov 0   ;;  %v1285_v23 = vmov 0.0  }
  0x15   :  { %1073 = vmatprep.subr.bf16.mxu0 %v1283_v1  ;;  %1097 = vmatprep.subr.bf16.mxu1 %v1283_v1  ;;  %v46_v6 = vld [vmem:[%s1740_s0 + $0x28] sm:$0xff]  ;;  %v281_v8 = vld [vmem:[%s1743_s3] sm:$0xff]  ;;  %v283_v11 = vld [vmem:[%s1743_s3 + $0x10] sm:$0xff] }
  0x16   :  { %80 = vperm.xlu1 %1130, %v43_v2   ;;  %70 = vperm.xlu0 %1129, %v41_v3   ;;  %v282_v9 = vld [vmem:[%s1743_s3 + $0x8] sm:$0xff]  ;;  %v284_v12 = vld [vmem:[%s1743_s3 + $0x18] sm:$0xff]  ;;  %v47_v14 = vld [vmem:[%s1740_s0 + $0x30] sm:$0xff] }
  0x17   :  { %v1074_v10 = vpack.c.bf16 %v282_v9, %v281_v8  ;;  %v48_v13 = vld [vmem:[%s1740_s0 + $0x38] sm:$0xff]  ;;  %v1077_v15 = vpack.c.bf16 %v284_v12, %v283_v11  ;;  %v285_v16 = vld [vmem:[%s1743_s3 + $0x20] sm:$0xff]  ;;  %v286_v17 = vld [vmem:[%s1743_s3 + $0x28] sm:$0xff]  ;;  %891 = vmatprep.mubr.msk.f32.mxu0 %vm1284_vm0, %v1285_v23  ;;  %998 = vmatprep.mubr.msk.f32.mxu1 %vm1284_vm0, %v1285_v23 }
  0x18   :  { %v50_v18 = vld [vmem:[%s1740_s0 + $0x48] sm:$0xff]  ;;  %v49_v19 = vld [vmem:[%s1740_s0 + $0x40] sm:$0xff]  ;;  %v1080_v20 = vpack.c.bf16 %v286_v17, %v285_v16  ;;  %v287_v21 = vld [vmem:[%s1743_s3 + $0x30] sm:$0xff] }
  0x19   :  { %1075 = vmatpush3.bf16.msra.mxu0 %v1074_v10  ;;  %v288_v22 = vld [vmem:[%s1743_s3 + $0x38] sm:$0xff]  ;;  %v51_v25 = vld [vmem:[%s1740_s0 + $0x50] sm:$0xff]  ;;  %v289_v27 = vld [vmem:[%s1743_s3 + $0x40] sm:$0xff] }
  0x1a   :  { %85 = vperm.xlu1 %1130, %v44_v4   ;;  %75 = vperm.xlu0 %1129, %v42_v5   ;;  %v52_v24 = vld [vmem:[%s1740_s0 + $0x58] sm:$0xff]  ;;  %v1083_v26 = vpack.c.bf16 %v288_v22, %v287_v21  ;;  %v290_v28 = vld [vmem:[%s1743_s3 + $0x48] sm:$0xff]  ;;  %v53_v30 = vld [vmem:[%s1740_s0 + $0x60] sm:$0xff] }
  0x1b   :  { %1076 = vmatprep.subr.bf16.mxu0 %v1283_v1  ;;  %v54_v29 = vld [vmem:[%s1740_s0 + $0x68] sm:$0xff]  ;;  %v1086_v31 = vpack.c.bf16 %v290_v28, %v289_v27  ;;  %v291_v32 = vld [vmem:[%s1743_s3 + $0x50] sm:$0xff]  ;;  %v292_v33 = vld [vmem:[%s1743_s3 + $0x58] sm:$0xff] }
  0x1c   :  { %v56_v34 = vld [vmem:[%s1740_s0 + $0x78] sm:$0xff]  ;;  %v55_v35 = vld [vmem:[%s1740_s0 + $0x70] sm:$0xff]  ;;  %v1089_v36 = vpack.c.bf16 %v292_v33, %v291_v32  ;;  %v293_v37 = vld [vmem:[%s1743_s3 + $0x60] sm:$0xff] }
  0x1d   :  { %1078 = vmatpush3.bf16.msra.mxu0 %v1077_v15  ;;  %v294_v38 = vld [vmem:[%s1743_s3 + $0x68] sm:$0xff]  ;;  %v57_v40 = vld [vmem:[%s1740_s0 + $0x80] sm:$0xff]  ;;  %v295_v42 = vld [vmem:[%s1743_s3 + $0x70] sm:$0xff] }
  0x1e   :  { %95 = vperm.xlu1 %1130, %v46_v6   ;;  %90 = vperm.xlu0 %1129, %v45_v7   ;;  %v58_v39 = vld [vmem:[%s1740_s0 + $0x88] sm:$0xff]  ;;  %v1092_v41 = vpack.c.bf16 %v294_v38, %v293_v37  ;;  %v296_v43 = vld [vmem:[%s1743_s3 + $0x78] sm:$0xff]  ;;  %v59_v45 = vld [vmem:[%s1740_s0 + $0x90] sm:$0xff] }
  0x1f   :  { %1079 = vmatprep.subr.bf16.mxu0 %v1283_v1  ;;  %v60_v44 = vld [vmem:[%s1740_s0 + $0x98] sm:$0xff]  ;;  %v1095_v46 = vpack.c.bf16 %v296_v43, %v295_v42  ;;  %v62_v47 = vld [vmem:[%s1740_s0 + $0xa8] sm:$0xff]  ;;  %v61_v48 = vld [vmem:[%s1740_s0 + $0xa0] sm:$0xff] }
  0x20   :  { %v64_v49 = vld [vmem:[%s1740_s0 + $0xb8] sm:$0xff]  ;;  %v63_v50 = vld [vmem:[%s1740_s0 + $0xb0] sm:$0xff]  ;;  %v65_v51 = vld [vmem:[%s1740_s0 + $0xc0] sm:$0xff] }
  0x21   :  { %1081 = vmatpush3.bf16.msra.mxu0 %v1080_v20  ;;  %v519_v52 = vld [vmem:[#allocation2] sm:$0xff]  ;;  %v520_v53 = vld [vmem:[#allocation2 + $0x8] sm:$0xff]  ;;  %v521_v54 = vld [vmem:[#allocation2 + $0x10] sm:$0xff] }
  0x22   :  { %105 = vperm.xlu1 %1130, %v48_v13   ;;  %100 = vperm.xlu0 %1129, %v47_v14   ;;  %v1098_v55 = vpack.c.bf16 %v520_v53, %v519_v52  ;;  %v522_v56 = vld [vmem:[#allocation2 + $0x18] sm:$0xff]  ;;  %v523_v58 = vld [vmem:[#allocation2 + $0x20] sm:$0xff]  ;;  %v524_v59 = vld [vmem:[#allocation2 + $0x28] sm:$0xff] }
  0x23   :  { %1082 = vmatprep.subr.bf16.mxu0 %v1283_v1  ;;  %v1101_v57 = vpack.c.bf16 %v522_v56, %v521_v54  ;;  %v1104_v60 = vpack.c.bf16 %v524_v59, %v523_v58  ;;  %v525_v61 = vld [vmem:[#allocation2 + $0x30] sm:$0xff]  ;;  %v526_v62 = vld [vmem:[#allocation2 + $0x38] sm:$0xff]  ;;  %v527_v0 = vld [vmem:[#allocation2 + $0x40] sm:$0xff] }
  0x24   :  { %1099 = vmatpush3.bf16.msra.mxu1 %v1098_v55  ;;  %v1107_v63 = vpack.c.bf16 %v526_v62, %v525_v61  ;;  %v528_v2 = vld [vmem:[#allocation2 + $0x48] sm:$0xff]  ;;  %v1484_v3 = vld [vmem:[%s1741_s1] ss:$0 sm:$0xff] }
  0x25   :  { %1084 = vmatpush3.bf16.msra.mxu0 %v1083_v26  ;;  %1100 = vmatprep.subr.bf16.mxu1 %v1283_v1  ;;  %v1489_v4 = vld [vmem:[%s1742_s2] ss:$0 sm:$0xff]  ;;  %v1110_v7 = vpack.c.bf16 %v528_v2, %v527_v0 }
  0x26   :  { %115 = vperm.xlu1 %1130, %v50_v18   ;;  %110 = vperm.xlu0 %1129, %v49_v19  }
  0x27   :  { %1085 = vmatprep.subr.bf16.mxu0 %v1283_v1 }
  0x28   :  { %1102 = vmatpush3.bf16.msra.mxu1 %v1101_v57 }
  0x29   :  { %1087 = vmatpush3.bf16.msra.mxu0 %v1086_v31  ;;  %1103 = vmatprep.subr.bf16.mxu1 %v1283_v1 }
  0x2a   :  { %125 = vperm.xlu1 %1130, %v52_v24   ;;  %120 = vperm.xlu0 %1129, %v51_v25  }
  0x2b   :  { %1088 = vmatprep.subr.bf16.mxu0 %v1283_v1 }
  0x2c   :  { %1105 = vmatpush3.bf16.msra.mxu1 %v1104_v60 }
  0x2d   :  { %1090 = vmatpush3.bf16.msra.mxu0 %v1089_v36  ;;  %1106 = vmatprep.subr.bf16.mxu1 %v1283_v1 }
  0x2e   :  { %135 = vperm.xlu1 %1130, %v54_v29   ;;  %130 = vperm.xlu0 %1129, %v53_v30  }
  0x2f   :  { %1091 = vmatprep.subr.bf16.mxu0 %v1283_v1 }
  0x30   :  { %1108 = vmatpush3.bf16.msra.mxu1 %v1107_v63 }
  0x31   :  { %1093 = vmatpush3.bf16.msra.mxu0 %v1092_v41  ;;  %1109 = vmatprep.subr.bf16.mxu1 %v1283_v1 }
  0x32   :  { %145 = vperm.xlu1 %1130, %v56_v34   ;;  %140 = vperm.xlu0 %1129, %v55_v35  }
  0x33   :  { %1094 = vmatprep.subr.bf16.mxu0 %v1283_v1 }
  0x34   :  { %1111 = vmatpush3.bf16.msra.mxu1 %v1110_v7 }
  0x35   :  { %1096 = vmatpush3.bf16.msra.mxu0 %v1095_v46  ;;  %1112 = vmatprep.subr.bf16.mxu1 %v1283_v1 }
  0x36   :  { %155 = vperm.xlu1 %1130, %v58_v39   ;;  %150 = vperm.xlu0 %1129, %v57_v40  }
  0x3a   :  { %165 = vperm.xlu1 %1130, %v60_v44   ;;  %160 = vperm.xlu0 %1129, %v59_v45  }
  0x3e   :  { %175 = vperm.xlu1 %1130, %v62_v47   ;;  %170 = vperm.xlu0 %1129, %v61_v48  }
  0x42   :  { %185 = vperm.xlu1 %1130, %v64_v49   ;;  %180 = vperm.xlu0 %1129, %v63_v50  }
  0x46   :  { %190 = vperm.xlu0 %1129, %v65_v51  }
  0x95   :  { %v81_v5 = vpop.permute.xlu1 %80  ;;  %v71_v6 = vpop.permute.xlu0 %70 }
  0x96   :  { %v199_v8 = vmul.f32 %v1484_v3, %v71_v6  ;;  %v201_v10 = vmul.f32 %v1484_v3, %v81_v5 }
  0x98   :  { %v230_v9 = vadd.f32 %v1489_v4, %v199_v8  ;;  %v232_v15 = vadd.f32 %v1489_v4, %v201_v10 }
  0x99   :  { %v86_v11 = vpop.permute.xlu1 %85  ;;  %v76_v12 = vpop.permute.xlu0 %75 }
  0x9a   :  { %v200_v13 = vmul.f32 %v1484_v3, %v76_v12  ;;  %1131 = vtanh.f32 %v230_v9  ;;  %v202_v18 = vmul.f32 %v1484_v3, %v86_v11 }
  0x9c   :  { %v231_v14 = vadd.f32 %v1489_v4, %v200_v13  ;;  %v233_v21 = vadd.f32 %v1489_v4, %v202_v18 }
  0x9d   :  { %v96_v16 = vpop.permute.xlu1 %95  ;;  %v91_v17 = vpop.permute.xlu0 %90 }
  0x9e   :  { %1133 = vtanh.f32 %v231_v14  ;;  %v203_v22 = vmul.f32 %v1484_v3, %v91_v17  ;;  %v204_v27 = vmul.f32 %v1484_v3, %v96_v16 }
  0x9f   :  { %1135 = vtanh.f32 %v232_v15 }
  0xa0   :  { %1137 = vtanh.f32 %v233_v21  ;;  %v234_v28 = vadd.f32 %v1489_v4, %v203_v22  ;;  %v235_v33 = vadd.f32 %v1489_v4, %v204_v27 }
  0xa1   :  { %v106_v19 = vpop.permute.xlu1 %105  ;;  %v101_v20 = vpop.permute.xlu0 %100 }
  0xa2   :  { %1139 = vtanh.f32 %v234_v28  ;;  %v205_v34 = vmul.f32 %v1484_v3, %v101_v20  ;;  %v206_v37 = vmul.f32 %v1484_v3, %v106_v19 }
  0xa3   :  { %1141 = vtanh.f32 %v235_v33 }
  0xa4   :  { %v1132_v24 = vpop.eup %1131  ;;  %v236_v38 = vadd.f32 %v1489_v4, %v205_v34  ;;  %v237_v42 = vadd.f32 %v1489_v4, %v206_v37 }
  0xa5   :  { %v116_v25 = vpop.permute.xlu1 %115  ;;  %v111_v26 = vpop.permute.xlu0 %110  ;;  %892 = vmatmul.mubr.f32.vlgmr.msra.gmra.mrb[0].mxu0 %v1132_v24 }
  0xa6   :  { %894 = vmatprep.mubr.msk.f32.mxu0 %vm1284_vm0, %v1285_v23  ;;  %1143 = vtanh.f32 %v236_v38  ;;  %v207_v43 = vmul.f32 %v1484_v3, %v111_v26  ;;  %v208_v49 = vmul.f32 %v1484_v3, %v116_v25 }
  0xa7   :  { %1145 = vtanh.f32 %v237_v42  ;;  %v529_v42 = vld [vmem:[#allocation2 + $0x50] sm:$0xff] }
  0xa8   :  { %v1134_v29 = vpop.eup %1133  ;;  %v238_v50 = vadd.f32 %v1489_v4, %v207_v43  ;;  %v239_v58 = vadd.f32 %v1489_v4, %v208_v49  ;;  %v530_v43 = vld [vmem:[#allocation2 + $0x58] sm:$0xff] }
  0xa9   :  { %v126_v30 = vpop.permute.xlu1 %125  ;;  %v121_v31 = vpop.permute.xlu0 %120  ;;  %895 = vmatmul.mubr.f32.gmra.mrb[2].mxu0 %v1134_v29 }
  0xaa   :  { %v1136_v32 = vpop.eup %1135  ;;  %897 = vmatprep.mubr.msk.f32.mxu0 %vm1284_vm0, %v1285_v23  ;;  %1147 = vtanh.f32 %v238_v50  ;;  %v209_v59 = vmul.f32 %v1484_v3, %v121_v31  ;;  %v210_v6 = vmul.f32 %v1484_v3, %v126_v30  ;;  %v533_v50 = vld [vmem:[#allocation2 + $0x70] sm:$0xff] }
  0xab   :  { %v1138_v39 = vpop.eup %1137  ;;  %1149 = vtanh.f32 %v239_v58 }
  0xac   :  { %v1140_v44 = vpop.eup %1139  ;;  %v240_v7 = vadd.f32 %v1489_v4, %v209_v59  ;;  %v241_v15 = vadd.f32 %v1489_v4, %v210_v6 }
  0xad   :  { %v1510_v35 = vpop.permute.xlu1 %135  ;;  %v131_v36 = vpop.permute.xlu0 %130  ;;  %898 = vmatmul.mubr.f32.gmra.mrb[4].mxu0 %v1136_v32 }
  0xae   :  { %900 = vmatprep.mubr.msk.f32.mxu0 %vm1284_vm0, %v1285_v23  ;;  %v1142_v53 = vpop.eup %1141  ;;  %1151 = vtanh.f32 %v240_v7  ;;  %v211_v16 = vmul.f32 %v1484_v3, %v131_v36  ;;  %v212_v22 = vmul.f32 %v1484_v3, %v1510_v35 }
  0xaf   :  { %1153 = vtanh.f32 %v241_v15 }
  0xb0   :  { %v1144_v62 = vpop.eup %1143  ;;  %v242_v24 = vadd.f32 %v1489_v4, %v211_v16  ;;  %v243_v27 = vadd.f32 %v1489_v4, %v212_v22 }
  0xb1   :  { %v1516_v40 = vpop.permute.xlu1 %145  ;;  %v1518_v41 = vpop.permute.xlu0 %140  ;;  %901 = vmatmul.mubr.f32.gmra.mrb[6].mxu0 %v1138_v39 }
  0xb2   :  { %903 = vmatprep.mubr.msk.f32.mxu0 %vm1284_vm0, %v1285_v23  ;;  %v1146_v10 = vpop.eup %1145  ;;  %1155 = vtanh.f32 %v242_v24  ;;  %v213_v28 = vmul.f32 %v1484_v3, %v1518_v41  ;;  %v214_v30 = vmul.f32 %v1484_v3, %v1516_v40 }
  0xb3   :  { %1157 = vtanh.f32 %v243_v27 }
  0xb4   :  { %v1148_v19 = vpop.eup %1147  ;;  %v244_v31 = vadd.f32 %v1489_v4, %v213_v28  ;;  %v245_v33 = vadd.f32 %v1489_v4, %v214_v30 }
  0xb5   :  { %v156_v45 = vpop.permute.xlu1 %155  ;;  %v151_v46 = vpop.permute.xlu0 %150  ;;  %904 = vmatmul.mubr.f32.gmra.mrb[8].mxu0 %v1140_v44  ;;  %v1113_v44 = vpack.c.bf16 %v530_v43, %v529_v42 }
  0xb6   :  { %v216_v47 = vmul.f32 %v1484_v3, %v156_v45  ;;  %v215_v48 = vmul.f32 %v1484_v3, %v151_v46  ;;  %906 = vmatprep.mubr.msk.f32.mxu0 %vm1284_vm0, %v1285_v23  ;;  %v1150_v26 = vpop.eup %1149  ;;  %1159 = vtanh.f32 %v244_v31  ;;  %v531_v46 = vld [vmem:[#allocation2 + $0x60] sm:$0xff] }
  0xb7   :  { %1161 = vtanh.f32 %v245_v33  ;;  %1114 = vmatpush3.bf16.msra.mxu1 %v1113_v44 }
  0xb8   :  { %v1531_v51 = vadd.f32 %v1489_v4, %v216_v47  ;;  %v1534_v52 = vadd.f32 %v1489_v4, %v215_v48  ;;  %v1152_v29 = vpop.eup %1151  ;;  %1115 = vmatprep.subr.bf16.mxu1 %v1283_v1  ;;  %v532_v47 = vld [vmem:[#allocation2 + $0x68] sm:$0xff] }
  0xb9   :  { %v166_v54 = vpop.permute.xlu1 %165  ;;  %v161_v55 = vpop.permute.xlu0 %160  ;;  %907 = vmatmul.mubr.f32.gmra.mrb[10].mxu0 %v1142_v53  ;;  %v1116_v48 = vpack.c.bf16 %v532_v47, %v531_v46 }
  0xba   :  { %v218_v56 = vmul.f32 %v1484_v3, %v166_v54  ;;  %v217_v57 = vmul.f32 %v1484_v3, %v161_v55  ;;  %909 = vmatprep.mubr.msk.f32.mxu0 %vm1284_vm0, %v1285_v23  ;;  %v1154_v32 = vpop.eup %1153  ;;  %1163 = vtanh.f32 %v1534_v52  ;;  %v1620_v54 = vld [vmem:[%s1744_s4] ss:$0 sm:$0xff] }
  0xbb   :  { %1165 = vtanh.f32 %v1531_v51  ;;  %1117 = vmatpush3.bf16.msra.mxu1 %v1116_v48  ;;  %v534_v51 = vld [vmem:[#allocation2 + $0x78] sm:$0xff] }
  0xbc   :  { %v1543_v60 = vadd.f32 %v1489_v4, %v218_v56  ;;  %v1546_v61 = vadd.f32 %v1489_v4, %v217_v57  ;;  %v1156_v34 = vpop.eup %1155  ;;  %1118 = vmatprep.subr.bf16.mxu1 %v1283_v1  ;;  %v1119_v52 = vpack.c.bf16 %v534_v51, %v533_v50 }
  0xbd   :  { %v176_v63 = vpop.permute.xlu1 %175  ;;  %v171_v0 = vpop.permute.xlu0 %170  ;;  %910 = vmatmul.mubr.f32.gmra.mrb[12].mxu0 %v1144_v62 }
  0xbe   :  { %v220_v2 = vmul.f32 %v1484_v3, %v176_v63  ;;  %v219_v5 = vmul.f32 %v1484_v3, %v171_v0  ;;  %912 = vmatprep.mubr.msk.f32.mxu0 %vm1284_vm0, %v1285_v23  ;;  %1167 = vtanh.f32 %v1546_v61 }
  0xbf   :  { %1169 = vtanh.f32 %v1543_v60  ;;  %1120 = vmatpush3.bf16.msra.mxu1 %v1119_v52 }
  0xc0   :  { %v1555_v8 = vadd.f32 %v1489_v4, %v220_v2  ;;  %v250_v9 = vadd.f32 %v1489_v4, %v219_v5 }
  0xc1   :  { %v186_v11 = vpop.permute.xlu1 %185  ;;  %v181_v12 = vpop.permute.xlu0 %180  ;;  %913 = vmatmul.mubr.f32.gmra.mrb[14].mxu0 %v1146_v10 }
  0xc2   :  { %v222_v13 = vmul.f32 %v1484_v3, %v186_v11  ;;  %v221_v14 = vmul.f32 %v1484_v3, %v181_v12  ;;  %915 = vmatprep.mubr.msk.f32.mxu0 %vm1284_vm0, %v1285_v23  ;;  %1171 = vtanh.f32 %v250_v9 }
  0xc3   :  { %1173 = vtanh.f32 %v1555_v8 }
  0xc4   :  { %v253_v17 = vadd.f32 %v1489_v4, %v222_v13  ;;  %v252_v18 = vadd.f32 %v1489_v4, %v221_v14 }
  0xc5   :  { %v191_v20 = vpop.permute.xlu0 %190  ;;  %916 = vmatmul.mubr.f32.gmra.mrb[16].mxu0 %v1148_v19 }
  0xc6   :  { %v223_v21 = vmul.f32 %v1484_v3, %v191_v20  ;;  %918 = vmatprep.mubr.msk.f32.mxu0 %vm1284_vm0, %v1285_v23  ;;  %v1158_v3 = vpop.eup %1157  ;;  %1175 = vtanh.f32 %v252_v18 }
  0xc7   :  { %v1160_v35 = vpop.eup %1159  ;;  %1177 = vtanh.f32 %v253_v17 }
  0xc8   :  { %v254_v25 = vadd.f32 %v1489_v4, %v223_v21  ;;  %v1162_v4 = vpop.eup %1161 }
  0xc9   :  { %919 = vmatmul.mubr.f32.gmra.mrb[18].mxu0 %v1150_v26  ;;  %v1164_v36 = vpop.eup %1163 }
  0xca   :  { %921 = vmatprep.mubr.msk.f32.mxu0 %vm1284_vm0, %v1285_v23  ;;  %v1166_v37 = vpop.eup %1165  ;;  %1179 = vtanh.f32 %v254_v25 }
  0xcb   :  { %v1168_v38 = vpop.eup %1167 }
  0xcc   :  { %v1170_v39 = vpop.eup %1169 }
  0xcd   :  { %922 = vmatmul.mubr.f32.gmra.mrb[20].mxu0 %v1152_v29  ;;  %v1172_v40 = vpop.eup %1171 }
  0xce   :  { %924 = vmatprep.mubr.msk.f32.mxu0 %vm1284_vm0, %v1285_v23  ;;  %v1174_v41 = vpop.eup %1173 }
  0xd0   :  { %v1176_v45 = vpop.eup %1175 }
  0xd1   :  { %925 = vmatmul.mubr.f32.gmra.mrb[22].mxu0 %v1154_v32  ;;  %v1178_v49 = vpop.eup %1177 }
  0xd2   :  { %927 = vmatprep.mubr.msk.f32.mxu0 %vm1284_vm0, %v1285_v23 }
  0xd4   :  { %v1180_v53 = vpop.eup %1179 }
  0xd5   :  { %928 = vmatmul.mubr.f32.gmra.mrb[24].mxu0 %v1156_v34 }
  0xd6   :  { %930 = vmatprep.mubr.msk.f32.mxu0 %vm1284_vm0, %v1285_v23 }
  0xd9   :  { %931 = vmatmul.mubr.f32.gmra.mrb[26].mxu0 %v1158_v3 }
  0xda   :  { %933 = vmatprep.mubr.msk.f32.mxu0 %vm1284_vm0, %v1285_v23 }
  0xdd   :  { %934 = vmatmul.mubr.f32.gmra.mrb[28].mxu0 %v1160_v35 }
  0xde   :  { %936 = vmatprep.mubr.msk.f32.mxu0 %vm1284_vm0, %v1285_v23 }
  0xe1   :  { %937 = vmatmul.mubr.f32.gmra.mrb[30].mxu0 %v1162_v4 }
  0xe2   :  { %939 = vmatprep.mubr.msk.f32.mxu0 %vm1284_vm0, %v1285_v23 }
  0xe5   :  { %940 = vmatmul.mubr.f32.gmra.mrb[32].mxu0 %v1164_v36 }
  0xe6   :  { %942 = vmatprep.mubr.msk.f32.mxu0 %vm1284_vm0, %v1285_v23 }
  0xe9   :  { %943 = vmatmul.mubr.f32.gmra.mrb[34].mxu0 %v1166_v37 }
  0xea   :  { %945 = vmatprep.mubr.msk.f32.mxu0 %vm1284_vm0, %v1285_v23 }
  0xed   :  { %946 = vmatmul.mubr.f32.gmra.mrb[36].mxu0 %v1168_v38 }
  0xee   :  { %948 = vmatprep.mubr.msk.f32.mxu0 %vm1284_vm0, %v1285_v23 }
  0xf1   :  { %949 = vmatmul.mubr.f32.gmra.mrb[38].mxu0 %v1170_v39 }
  0xf2   :  { %951 = vmatprep.mubr.msk.f32.mxu0 %vm1284_vm0, %v1285_v23 }
  0xf5   :  { %952 = vmatmul.mubr.f32.gmra.mrb[40].mxu0 %v1172_v40 }
  0xf6   :  { %954 = vmatprep.mubr.msk.f32.mxu0 %vm1284_vm0, %v1285_v23 }
  0xf9   :  { %955 = vmatmul.mubr.f32.gmra.mrb[42].mxu0 %v1174_v41 }
  0xfa   :  { %957 = vmatprep.mubr.msk.f32.mxu0 %vm1284_vm0, %v1285_v23 }
  0xfd   :  { %958 = vmatmul.mubr.f32.gmra.mrb[44].mxu0 %v1176_v45 }
  0xfe   :  { %960 = vmatprep.mubr.msk.f32.mxu0 %vm1284_vm0, %v1285_v23 }
 0x101   :  { %961 = vmatmul.mubr.f32.gmra.mrb[46].mxu0 %v1178_v49 }
 0x102   :  { %963 = vmatprep.mubr.msk.f32.mxu0 %vm1284_vm0, %v1285_v23 }
 0x105   :  { %964 = vmatmul.mubr.f32.gmra.mrb[48].mxu0 %v1180_v53 }
 0x178   :  { %v369_v55 = vpop.f32.mrb[0].mxu0 }
 0x179   :  { %v370_v56 = vadd.f32 %v1620_v54, %v369_v55  ;;  %v893_v57 = vpop.f32.mrb[1].mxu0 }
 0x17b   :  { %1181 = vtanh.f32 %v370_v56 }
 0x17c   :  { %v374_v1 = vpop.f32.mrb[2].mxu0 }
 0x17d   :  { %v375_v58 = vadd.f32 %v1620_v54, %v374_v1  ;;  %v896_v59 = vpop.f32.mrb[3].mxu0 }
 0x17f   :  { %1183 = vtanh.f32 %v375_v58 }
 0x180   :  { %v379_v60 = vpop.f32.mrb[4].mxu0 }
 0x181   :  { %v380_v61 = vadd.f32 %v1620_v54, %v379_v60  ;;  %v899_v62 = vpop.f32.mrb[5].mxu0 }
 0x183   :  { %1185 = vtanh.f32 %v380_v61 }
 0x184   :  { %v384_v63 = vpop.f32.mrb[6].mxu0 }
 0x185   :  { %v1182_v0 = vpop.eup %1181  ;;  %v385_v2 = vadd.f32 %v1620_v54, %v384_v63  ;;  %v902_v5 = vpop.f32.mrb[7].mxu0 }
 0x186   :  { %999 = vmatmul.mubr.f32.vlgmr.msra.gmra.mrb[0].mxu1 %v1182_v0 }
 0x187   :  { %1187 = vtanh.f32 %v385_v2  ;;  %1001 = vmatprep.mubr.msk.f32.mxu1 %vm1284_vm0, %v1285_v23 }
 0x188   :  { %v389_v6 = vpop.f32.mrb[8].mxu0 }
 0x189   :  { %v1184_v7 = vpop.eup %1183  ;;  %v390_v8 = vadd.f32 %v1620_v54, %v389_v6  ;;  %v905_v9 = vpop.f32.mrb[9].mxu0 }
 0x18a   :  { %1002 = vmatmul.mubr.f32.gmra.mrb[2].mxu1 %v1184_v7 }
 0x18b   :  { %1189 = vtanh.f32 %v390_v8  ;;  %1004 = vmatprep.mubr.msk.f32.mxu1 %vm1284_vm0, %v1285_v23 }
 0x18c   :  { %v394_v10 = vpop.f32.mrb[10].mxu0 }
 0x18d   :  { %v1186_v11 = vpop.eup %1185  ;;  %v395_v12 = vadd.f32 %v1620_v54, %v394_v10  ;;  %v908_v13 = vpop.f32.mrb[11].mxu0 }
 0x18e   :  { %1005 = vmatmul.mubr.f32.gmra.mrb[4].mxu1 %v1186_v11 }
 0x18f   :  { %1191 = vtanh.f32 %v395_v12  ;;  %1007 = vmatprep.mubr.msk.f32.mxu1 %vm1284_vm0, %v1285_v23 }
 0x190   :  { %v399_v14 = vpop.f32.mrb[12].mxu0 }
 0x191   :  { %v1188_v15 = vpop.eup %1187  ;;  %v400_v16 = vadd.f32 %v1620_v54, %v399_v14  ;;  %v911_v17 = vpop.f32.mrb[13].mxu0 }
 0x192   :  { %1008 = vmatmul.mubr.f32.gmra.mrb[6].mxu1 %v1188_v15 }
 0x193   :  { %1193 = vtanh.f32 %v400_v16  ;;  %1010 = vmatprep.mubr.msk.f32.mxu1 %vm1284_vm0, %v1285_v23 }
 0x194   :  { %v404_v18 = vpop.f32.mrb[14].mxu0 }
 0x195   :  { %v1190_v19 = vpop.eup %1189  ;;  %v405_v20 = vadd.f32 %v1620_v54, %v404_v18  ;;  %v914_v21 = vpop.f32.mrb[15].mxu0 }
 0x196   :  { %1011 = vmatmul.mubr.f32.gmra.mrb[8].mxu1 %v1190_v19 }
 0x197   :  { %1195 = vtanh.f32 %v405_v20  ;;  %1013 = vmatprep.mubr.msk.f32.mxu1 %vm1284_vm0, %v1285_v23 }
 0x198   :  { %v409_v22 = vpop.f32.mrb[16].mxu0 }
 0x199   :  { %v1192_v24 = vpop.eup %1191  ;;  %v410_v25 = vadd.f32 %v1620_v54, %v409_v22  ;;  %v917_v26 = vpop.f32.mrb[17].mxu0 }
 0x19a   :  { %1014 = vmatmul.mubr.f32.gmra.mrb[10].mxu1 %v1192_v24 }
 0x19b   :  { %1197 = vtanh.f32 %v410_v25  ;;  %1016 = vmatprep.mubr.msk.f32.mxu1 %vm1284_vm0, %v1285_v23 }
 0x19c   :  { %v414_v27 = vpop.f32.mrb[18].mxu0 }
 0x19d   :  { %v1194_v28 = vpop.eup %1193  ;;  %v415_v29 = vadd.f32 %v1620_v54, %v414_v27  ;;  %v920_v30 = vpop.f32.mrb[19].mxu0 }
 0x19e   :  { %1017 = vmatmul.mubr.f32.gmra.mrb[12].mxu1 %v1194_v28 }
 0x19f   :  { %1199 = vtanh.f32 %v415_v29  ;;  %1019 = vmatprep.mubr.msk.f32.mxu1 %vm1284_vm0, %v1285_v23 }
 0x1a0   :  { %v419_v31 = vpop.f32.mrb[20].mxu0 }
 0x1a1   :  { %v1196_v32 = vpop.eup %1195  ;;  %v420_v33 = vadd.f32 %v1620_v54, %v419_v31  ;;  %v923_v34 = vpop.f32.mrb[21].mxu0 }
 0x1a2   :  { %1020 = vmatmul.mubr.f32.gmra.mrb[14].mxu1 %v1196_v32 }
 0x1a3   :  { %1201 = vtanh.f32 %v420_v33  ;;  %1022 = vmatprep.mubr.msk.f32.mxu1 %vm1284_vm0, %v1285_v23 }
 0x1a4   :  { %v424_v3 = vpop.f32.mrb[22].mxu0 }
 0x1a5   :  { %v1198_v35 = vpop.eup %1197  ;;  %v425_v4 = vadd.f32 %v1620_v54, %v424_v3  ;;  %v926_v36 = vpop.f32.mrb[23].mxu0 }
 0x1a6   :  { %1023 = vmatmul.mubr.f32.gmra.mrb[16].mxu1 %v1198_v35 }
 0x1a7   :  { %1203 = vtanh.f32 %v425_v4  ;;  %1025 = vmatprep.mubr.msk.f32.mxu1 %vm1284_vm0, %v1285_v23 }
 0x1a8   :  { %v429_v37 = vpop.f32.mrb[24].mxu0 }
 0x1a9   :  { %v1200_v38 = vpop.eup %1199  ;;  %v430_v39 = vadd.f32 %v1620_v54, %v429_v37  ;;  %v929_v40 = vpop.f32.mrb[25].mxu0 }
 0x1aa   :  { %1026 = vmatmul.mubr.f32.gmra.mrb[18].mxu1 %v1200_v38 }
 0x1ab   :  { %1205 = vtanh.f32 %v430_v39  ;;  %1028 = vmatprep.mubr.msk.f32.mxu1 %vm1284_vm0, %v1285_v23 }
 0x1ac   :  { %v434_v41 = vpop.f32.mrb[26].mxu0 }
 0x1ad   :  { %v1202_v42 = vpop.eup %1201  ;;  %v435_v43 = vadd.f32 %v1620_v54, %v434_v41  ;;  %v932_v44 = vpop.f32.mrb[27].mxu0 }
 0x1ae   :  { %1029 = vmatmul.mubr.f32.gmra.mrb[20].mxu1 %v1202_v42 }
 0x1af   :  { %1207 = vtanh.f32 %v435_v43  ;;  %1031 = vmatprep.mubr.msk.f32.mxu1 %vm1284_vm0, %v1285_v23 }
 0x1b0   :  { %v439_v45 = vpop.f32.mrb[28].mxu0 }
 0x1b1   :  { %v1204_v46 = vpop.eup %1203  ;;  %v440_v47 = vadd.f32 %v1620_v54, %v439_v45  ;;  %v935_v48 = vpop.f32.mrb[29].mxu0 }
 0x1b2   :  { %1032 = vmatmul.mubr.f32.gmra.mrb[22].mxu1 %v1204_v46 }
 0x1b3   :  { %1209 = vtanh.f32 %v440_v47  ;;  %1034 = vmatprep.mubr.msk.f32.mxu1 %vm1284_vm0, %v1285_v23 }
 0x1b4   :  { %v444_v49 = vpop.f32.mrb[30].mxu0 }
 0x1b5   :  { %v1206_v50 = vpop.eup %1205  ;;  %v445_v51 = vadd.f32 %v1620_v54, %v444_v49  ;;  %v938_v52 = vpop.f32.mrb[31].mxu0 }
 0x1b6   :  { %1035 = vmatmul.mubr.f32.gmra.mrb[24].mxu1 %v1206_v50 }
 0x1b7   :  { %1211 = vtanh.f32 %v445_v51  ;;  %1037 = vmatprep.mubr.msk.f32.mxu1 %vm1284_vm0, %v1285_v23 }
 0x1b8   :  { %v449_v53 = vpop.f32.mrb[32].mxu0 }
 0x1b9   :  { %v1208_v55 = vpop.eup %1207  ;;  %v450_v56 = vadd.f32 %v1620_v54, %v449_v53  ;;  %v941_v57 = vpop.f32.mrb[33].mxu0 }
 0x1ba   :  { %1038 = vmatmul.mubr.f32.gmra.mrb[26].mxu1 %v1208_v55 }
 0x1bb   :  { %1213 = vtanh.f32 %v450_v56  ;;  %1040 = vmatprep.mubr.msk.f32.mxu1 %vm1284_vm0, %v1285_v23 }
 0x1bc   :  { %v454_v1 = vpop.f32.mrb[34].mxu0 }
 0x1bd   :  { %v1210_v58 = vpop.eup %1209  ;;  %v455_v59 = vadd.f32 %v1620_v54, %v454_v1  ;;  %v944_v60 = vpop.f32.mrb[35].mxu0 }
 0x1be   :  { %1041 = vmatmul.mubr.f32.gmra.mrb[28].mxu1 %v1210_v58 }
 0x1bf   :  { %1215 = vtanh.f32 %v455_v59  ;;  %1043 = vmatprep.mubr.msk.f32.mxu1 %vm1284_vm0, %v1285_v23 }
 0x1c0   :  { %v459_v61 = vpop.f32.mrb[36].mxu0 }
 0x1c1   :  { %v1212_v62 = vpop.eup %1211  ;;  %v460_v63 = vadd.f32 %v1620_v54, %v459_v61  ;;  %v947_v0 = vpop.f32.mrb[37].mxu0 }
 0x1c2   :  { %1044 = vmatmul.mubr.f32.gmra.mrb[30].mxu1 %v1212_v62 }
 0x1c3   :  { %1217 = vtanh.f32 %v460_v63  ;;  %1046 = vmatprep.mubr.msk.f32.mxu1 %vm1284_vm0, %v1285_v23 }
 0x1c4   :  { %v464_v2 = vpop.f32.mrb[38].mxu0 }
 0x1c5   :  { %v1214_v5 = vpop.eup %1213  ;;  %v465_v6 = vadd.f32 %v1620_v54, %v464_v2  ;;  %v950_v7 = vpop.f32.mrb[39].mxu0 }
 0x1c6   :  { %1047 = vmatmul.mubr.f32.gmra.mrb[32].mxu1 %v1214_v5 }
 0x1c7   :  { %1219 = vtanh.f32 %v465_v6  ;;  %1049 = vmatprep.mubr.msk.f32.mxu1 %vm1284_vm0, %v1285_v23 }
 0x1c8   :  { %v469_v8 = vpop.f32.mrb[40].mxu0 }
 0x1c9   :  { %v1216_v9 = vpop.eup %1215  ;;  %v470_v10 = vadd.f32 %v1620_v54, %v469_v8  ;;  %v953_v11 = vpop.f32.mrb[41].mxu0 }
 0x1ca   :  { %1050 = vmatmul.mubr.f32.gmra.mrb[34].mxu1 %v1216_v9 }
 0x1cb   :  { %1221 = vtanh.f32 %v470_v10  ;;  %1052 = vmatprep.mubr.msk.f32.mxu1 %vm1284_vm0, %v1285_v23 }
 0x1cc   :  { %v474_v12 = vpop.f32.mrb[42].mxu0 }
 0x1cd   :  { %v1218_v13 = vpop.eup %1217  ;;  %v475_v14 = vadd.f32 %v1620_v54, %v474_v12  ;;  %v956_v15 = vpop.f32.mrb[43].mxu0 }
 0x1ce   :  { %1053 = vmatmul.mubr.f32.gmra.mrb[36].mxu1 %v1218_v13 }
 0x1cf   :  { %1223 = vtanh.f32 %v475_v14  ;;  %1055 = vmatprep.mubr.msk.f32.mxu1 %vm1284_vm0, %v1285_v23 }
 0x1d0   :  { %v479_v16 = vpop.f32.mrb[44].mxu0 }
 0x1d1   :  { %v1220_v17 = vpop.eup %1219  ;;  %v480_v18 = vadd.f32 %v1620_v54, %v479_v16  ;;  %v959_v19 = vpop.f32.mrb[45].mxu0 }
 0x1d2   :  { %1056 = vmatmul.mubr.f32.gmra.mrb[38].mxu1 %v1220_v17 }
 0x1d3   :  { %1225 = vtanh.f32 %v480_v18  ;;  %1058 = vmatprep.mubr.msk.f32.mxu1 %vm1284_vm0, %v1285_v23 }
 0x1d4   :  { %v484_v20 = vpop.f32.mrb[46].mxu0 }
 0x1d5   :  { %v1222_v21 = vpop.eup %1221  ;;  %v485_v22 = vadd.f32 %v1620_v54, %v484_v20  ;;  %v962_v24 = vpop.f32.mrb[47].mxu0 }
 0x1d6   :  { %1059 = vmatmul.mubr.f32.gmra.mrb[40].mxu1 %v1222_v21 }
 0x1d7   :  { %1227 = vtanh.f32 %v485_v22  ;;  %1061 = vmatprep.mubr.msk.f32.mxu1 %vm1284_vm0, %v1285_v23 }
 0x1d8   :  { %v489_v25 = vpop.f32.mrb[48].mxu0 }
 0x1d9   :  { %v1224_v26 = vpop.eup %1223  ;;  %v490_v27 = vadd.f32 %v1620_v54, %v489_v25  ;;  %v965_v28 = vpop.f32.mrb[49].mxu0  ;;  %v1698_v54 = vld [vmem:[%s1746_s6] ss:$0 sm:$0xff]  ;;  %s1286_s6 = smov [#allocation5]  }
 0x1da   :  { %1062 = vmatmul.mubr.f32.gmra.mrb[42].mxu1 %v1224_v26  ;;  %s761_s10 = sshll.u32 %s1286_s6, 4  ;;  %s762_s10 = int_to_ptr.vmem [resolvable:$true] %s761_s10 }
 0x1db   :  { %1229 = vtanh.f32 %v490_v27  ;;  %1064 = vmatprep.mubr.msk.f32.mxu1 %vm1284_vm0, %v1285_v23  ;;  %s1253_s13 = scalar_lea.vmem %s762_s10, 3200  ;;  %p1258_p9 = scmp.lt.s32.totalorder %s762_s10, %s762_s10 }
 0x1dc   :  { %p1254_p8 = scmp.ne.s32.totalorder %s762_s10, %s1253_s13  ;;  %p1259_p10 = scmp.lt.s32.totalorder %s1253_s13, %s1253_s13 }
 0x1dd   :  { %v1226_v29 = vpop.eup %1225 }
 0x1de   :  { %1065 = vmatmul.mubr.f32.gmra.mrb[44].mxu1 %v1226_v29  ;;  %p1260_p11 = por %p1259_p10, %p1258_p9 }
 0x1df   :  { %1067 = vmatprep.mubr.msk.f32.mxu1 %vm1284_vm0, %v1285_v23 }
 0x1e0   :  { %p1261_p12 = pnand %p1260_p11, %p1254_p8 }
 0x1e1   :  { %v1228_v30 = vpop.eup %1227 }
 0x1e2   :  { %1068 = vmatmul.mubr.f32.gmra.mrb[46].mxu1 %v1228_v30 }
 0x1e3   :  { %1070 = vmatprep.mubr.msk.f32.mxu1 %vm1284_vm0, %v1285_v23 }
 0x1e5   :  { %v1230_v31 = vpop.eup %1229 }
 0x1e6   :  { %1071 = vmatmul.mubr.f32.gmra.mrb[48].mxu1 %v1230_v31 }
 0x259   :  { %v607_v32 = vpop.f32.mrb[0].mxu1 }
 0x25a   :  { %v608_v33 = vadd.f32 %v1698_v54, %v607_v32  ;;  %v1000_v34 = vpop.f32.mrb[1].mxu1 }
 0x25c   :  { %731 = vst [vmem:[#allocation5] sm:$0xff] %v608_v33 }
 0x25d   :  { %v612_v3 = vpop.f32.mrb[2].mxu1 }
 0x25e   :  { %v613_v35 = vadd.f32 %v1698_v54, %v612_v3  ;;  %v1003_v4 = vpop.f32.mrb[3].mxu1 }
 0x260   :  { %732 = vst [vmem:[#allocation5 + $0x8] sm:$0xff] %v613_v35 }
 0x261   :  { %v617_v36 = vpop.f32.mrb[4].mxu1 }
 0x262   :  { %v618_v23 = vadd.f32 %v1698_v54, %v617_v36  ;;  %v1006_v37 = vpop.f32.mrb[5].mxu1 }
 0x264   :  { %733 = vst [vmem:[#allocation5 + $0x10] sm:$0xff] %v618_v23 }
 0x265   :  { %v622_v38 = vpop.f32.mrb[6].mxu1 }
 0x266   :  { %v623_v39 = vadd.f32 %v1698_v54, %v622_v38  ;;  %v1009_v40 = vpop.f32.mrb[7].mxu1 }
 0x268   :  { %734 = vst [vmem:[#allocation5 + $0x18] sm:$0xff] %v623_v39 }
 0x269   :  { %v627_v41 = vpop.f32.mrb[8].mxu1 }
 0x26a   :  { %v628_v42 = vadd.f32 %v1698_v54, %v627_v41  ;;  %v1012_v43 = vpop.f32.mrb[9].mxu1 }
 0x26c   :  { %735 = vst [vmem:[#allocation5 + $0x20] sm:$0xff] %v628_v42 }
 0x26d   :  { %v632_v44 = vpop.f32.mrb[10].mxu1 }
 0x26e   :  { %v633_v45 = vadd.f32 %v1698_v54, %v632_v44  ;;  %v1015_v46 = vpop.f32.mrb[11].mxu1 }
 0x270   :  { %736 = vst [vmem:[#allocation5 + $0x28] sm:$0xff] %v633_v45 }
 0x271   :  { %v637_v47 = vpop.f32.mrb[12].mxu1 }
 0x272   :  { %v638_v48 = vadd.f32 %v1698_v54, %v637_v47  ;;  %v1018_v49 = vpop.f32.mrb[13].mxu1 }
 0x274   :  { %737 = vst [vmem:[#allocation5 + $0x30] sm:$0xff] %v638_v48 }
 0x275   :  { %v642_v50 = vpop.f32.mrb[14].mxu1 }
 0x276   :  { %v643_v51 = vadd.f32 %v1698_v54, %v642_v50  ;;  %v1021_v52 = vpop.f32.mrb[15].mxu1 }
 0x278   :  { %738 = vst [vmem:[#allocation5 + $0x38] sm:$0xff] %v643_v51 }
 0x279   :  { %v647_v53 = vpop.f32.mrb[16].mxu1 }
 0x27a   :  { %v648_v55 = vadd.f32 %v1698_v54, %v647_v53  ;;  %v1024_v56 = vpop.f32.mrb[17].mxu1 }
 0x27c   :  { %739 = vst [vmem:[#allocation5 + $0x40] sm:$0xff] %v648_v55 }
 0x27d   :  { %v652_v57 = vpop.f32.mrb[18].mxu1 }
 0x27e   :  { %v653_v1 = vadd.f32 %v1698_v54, %v652_v57  ;;  %v1027_v58 = vpop.f32.mrb[19].mxu1 }
 0x280   :  { %740 = vst [vmem:[#allocation5 + $0x48] sm:$0xff] %v653_v1 }
 0x281   :  { %v657_v59 = vpop.f32.mrb[20].mxu1 }
 0x282   :  { %v658_v60 = vadd.f32 %v1698_v54, %v657_v59  ;;  %v1030_v61 = vpop.f32.mrb[21].mxu1 }
 0x284   :  { %741 = vst [vmem:[#allocation5 + $0x50] sm:$0xff] %v658_v60 }
 0x285   :  { %v662_v62 = vpop.f32.mrb[22].mxu1 }
 0x286   :  { %v663_v63 = vadd.f32 %v1698_v54, %v662_v62  ;;  %v1033_v0 = vpop.f32.mrb[23].mxu1 }
 0x288   :  { %742 = vst [vmem:[#allocation5 + $0x58] sm:$0xff] %v663_v63 }
 0x289   :  { %v667_v2 = vpop.f32.mrb[24].mxu1 }
 0x28a   :  { %v668_v5 = vadd.f32 %v1698_v54, %v667_v2  ;;  %v1036_v6 = vpop.f32.mrb[25].mxu1 }
 0x28c   :  { %743 = vst [vmem:[#allocation5 + $0x60] sm:$0xff] %v668_v5 }
 0x28d   :  { %v672_v7 = vpop.f32.mrb[26].mxu1 }
 0x28e   :  { %v673_v8 = vadd.f32 %v1698_v54, %v672_v7  ;;  %v1039_v9 = vpop.f32.mrb[27].mxu1 }
 0x290   :  { %744 = vst [vmem:[#allocation5 + $0x68] sm:$0xff] %v673_v8 }
 0x291   :  { %v677_v10 = vpop.f32.mrb[28].mxu1 }
 0x292   :  { %v678_v11 = vadd.f32 %v1698_v54, %v677_v10  ;;  %v1042_v12 = vpop.f32.mrb[29].mxu1 }
 0x294   :  { %745 = vst [vmem:[#allocation5 + $0x70] sm:$0xff] %v678_v11 }
 0x295   :  { %v682_v13 = vpop.f32.mrb[30].mxu1 }
 0x296   :  { %v683_v14 = vadd.f32 %v1698_v54, %v682_v13  ;;  %v1045_v15 = vpop.f32.mrb[31].mxu1 }
 0x298   :  { %746 = vst [vmem:[#allocation5 + $0x78] sm:$0xff] %v683_v14 }
 0x299   :  { %v687_v16 = vpop.f32.mrb[32].mxu1 }
 0x29a   :  { %v688_v17 = vadd.f32 %v1698_v54, %v687_v16  ;;  %v1048_v18 = vpop.f32.mrb[33].mxu1 }
 0x29c   :  { %747 = vst [vmem:[#allocation5 + $0x80] sm:$0xff] %v688_v17 }
 0x29d   :  { %v692_v19 = vpop.f32.mrb[34].mxu1 }
 0x29e   :  { %v693_v20 = vadd.f32 %v1698_v54, %v692_v19  ;;  %v1051_v21 = vpop.f32.mrb[35].mxu1 }
 0x2a0   :  { %748 = vst [vmem:[#allocation5 + $0x88] sm:$0xff] %v693_v20 }
 0x2a1   :  { %v697_v22 = vpop.f32.mrb[36].mxu1 }
 0x2a2   :  { %v698_v24 = vadd.f32 %v1698_v54, %v697_v22  ;;  %v1054_v25 = vpop.f32.mrb[37].mxu1 }
 0x2a4   :  { %749 = vst [vmem:[#allocation5 + $0x90] sm:$0xff] %v698_v24 }
 0x2a5   :  { %v702_v26 = vpop.f32.mrb[38].mxu1 }
 0x2a6   :  { %v703_v27 = vadd.f32 %v1698_v54, %v702_v26  ;;  %v1057_v28 = vpop.f32.mrb[39].mxu1 }
 0x2a8   :  { %750 = vst [vmem:[#allocation5 + $0x98] sm:$0xff] %v703_v27 }
 0x2a9   :  { %v707_v29 = vpop.f32.mrb[40].mxu1 }
 0x2aa   :  { %v708_v30 = vadd.f32 %v1698_v54, %v707_v29  ;;  %v1060_v31 = vpop.f32.mrb[41].mxu1 }
 0x2ac   :  { %751 = vst [vmem:[#allocation5 + $0xa0] sm:$0xff] %v708_v30 }
 0x2ad   :  { %v712_v32 = vpop.f32.mrb[42].mxu1 }
 0x2ae   :  { %v713_v33 = vadd.f32 %v1698_v54, %v712_v32  ;;  %v1063_v34 = vpop.f32.mrb[43].mxu1 }
 0x2b0   :  { %752 = vst [vmem:[#allocation5 + $0xa8] sm:$0xff] %v713_v33 }
 0x2b1   :  { %v717_v3 = vpop.f32.mrb[44].mxu1 }
 0x2b2   :  { %v718_v35 = vadd.f32 %v1698_v54, %v717_v3  ;;  %v1066_v4 = vpop.f32.mrb[45].mxu1 }
 0x2b4   :  { %753 = vst [vmem:[#allocation5 + $0xb0] sm:$0xff] %v718_v35 }
 0x2b5   :  { %v722_v36 = vpop.f32.mrb[46].mxu1 }
 0x2b6   :  { %v723_v23 = vadd.f32 %v1698_v54, %v722_v36  ;;  %v1069_v37 = vpop.f32.mrb[47].mxu1 }
 0x2b8   :  { %754 = vst [vmem:[#allocation5 + $0xb8] sm:$0xff] %v723_v23 }
 0x2b9   :  { %v727_v38 = vpop.f32.mrb[48].mxu1 }
 0x2ba   :  { %v728_v39 = vadd.f32 %v1698_v54, %v727_v38  ;;  %v1072_v40 = vpop.f32.mrb[49].mxu1 }
 0x2bc   :  { %755 = vst [vmem:[#allocation5 + $0xc0] sm:$0xff] %v728_v39 }
 0x2bd   :  { %1264 = shalt.err (!%p1261_p12)
}
 0x2be   :  { %s1265_s16 = scalar_lea.hbm %s1747_s7, 3200 }
 0x2bf   :  { %p1266_p13 = scmp.ne.s32.totalorder %s1747_s7, %s1265_s16  ;;  %p1269_p0 = scmp.lt.u32.totalorder %s1265_s16, %s1747_s7 }
 0x2c1   :  { %p1271_p1 = pnand %p1269_p0, %p1266_p13 }
 0x2c3   :  { %1274 = shalt.err (!%p1271_p1)
}
 0x2c4   :  { %767 = dma.vmem_to_hbm [thread:$0]  %s762_s10, 3200, %s1747_s7, [#allocation4], %s1280_s11, %s1280_s11, %s1281_s12  }
 0x2c5   :  { %1277 = dma.done.wait [#allocation4], 3200  }
 0x2c6   :  { %1278 = vsyncadd [#allocation4], 4294964096 }
 0x2c7   :  { %771 = vsyncpa [#allocation3], 1 }
 0x2c8   :  { %772 = vsyncpa [#allocation4], 1 }

</bundles_post_ra>
